<compile_context>
chip_gen: v7x
topology: tpu7x:2x2x1
jax: 0.10.0
libtpu: 0.0.40
codegen_flags: <defaults>
</compile_context>

<pallas_src>
import math
import functools

import numpy as np
import jax
import jax.numpy as jnp
from jax.experimental import pallas as pl
from jax.experimental.pallas import tpu as pltpu


# ---------------------------------------------------------------------------
# Kernel: sinusoidal embedding + Linear -> SiLU -> Linear, one batch block.
# ---------------------------------------------------------------------------
def timestep_embedder_kernel(t_ref, w1_ref, b_ref, w2_ref, o_ref, emb_ref, *, coef):
    # t_ref:   (Bt, 1)   f32   timesteps for this batch block
    # w1_ref:  (F, H)    bf16  first Linear weight (unsplit)
    # b_ref:   (2, H)    f32   row 0 = b1, row 1 = b2
    # w2_ref:  (H, H)    bf16  second Linear weight
    # o_ref:   (Bt, H)   out_dtype
    # emb_ref: (Bt, F)   bf16  VMEM scratch for [cos, sin]
    half = emb_ref.shape[1] // 2

    # freqs generated in-kernel: exp(-log(max_period) * k / half), k = 0..half-1
    k = jax.lax.broadcasted_iota(jnp.int32, (1, half), 1).astype(jnp.float32)
    freqs = jnp.exp(coef * k)                                  # (1, half), EUP
    args = t_ref[...] * freqs                                  # (Bt, half), f32

    # Lane-aligned stores of the two halves (half is a full multiple of 128),
    # so the concat [cos, sin] never needs an XLU relayout.
    emb_ref[:, :half] = jnp.cos(args).astype(emb_ref.dtype)
    emb_ref[:, half:] = jnp.sin(args).astype(emb_ref.dtype)

    # First Linear: single K=F MXU pass, f32 accumulation.
    h = jnp.dot(emb_ref[...], w1_ref[...], preferred_element_type=jnp.float32)
    h = h + b_ref[0:1, :]

    # SiLU: exp + approx reciprocal both land on the EUP slot.
    h = h * pl.reciprocal(1.0 + jnp.exp(-h), approx=True)

    # Second Linear.
    out = jnp.dot(h.astype(w2_ref.dtype), w2_ref[...],
                  preferred_element_type=jnp.float32)
    o_ref[...] = (out + b_ref[1:2, :]).astype(o_ref.dtype)


# ---------------------------------------------------------------------------
# Wrapper
# ---------------------------------------------------------------------------
def timestep_embedder(t, params, *, freq_dim, max_period=10000.0,
                      out_dtype=jnp.bfloat16, block_rows=256):
    """Pallas forward of TimestepEmbedder.  t: (N,) fractional timesteps."""
    assert freq_dim % 2 == 0, "odd frequency_embedding_size not supported"
    half = freq_dim // 2
    assert half % 128 == 0, "freq_dim/2 must be a multiple of 128 (lane-aligned halves)"
    H = params['w2'].shape[1]
    assert H % 128 == 0, "hidden_size must be a multiple of 128 (lane-dense output)"
    N = t.shape[0]

    # Batch tiling: one grid step for small N, parallel blocks for large N.
    if N <= block_rows:
        Bt = max(8, ((N + 7) // 8) * 8)
    else:
        Bt = block_rows
    Np = ((N + Bt - 1) // Bt) * Bt
    grid = (Np // Bt,)

    t_pad = jnp.pad(t.astype(jnp.float32)[:, None], ((0, Np - N), (0, 0)))

    coef = -math.log(max_period) / half

    out_bytes = jnp.dtype(out_dtype).itemsize
    cost = pl.CostEstimate(
        flops=2 * Np * (freq_dim * H + H * H),
        transcendentals=Np * (freq_dim + H),
        bytes_accessed=(freq_dim * H + H * H) * 2 + 2 * H * 4
                       + Np * 4 + Np * H * out_bytes,
    )

    out = pl.pallas_call(
        functools.partial(timestep_embedder_kernel, coef=coef),
        out_shape=jax.ShapeDtypeStruct((Np, H), out_dtype),
        grid_spec=pltpu.PrefetchScalarGridSpec(
            num_scalar_prefetch=0,
            grid=grid,
            in_specs=[
                pl.BlockSpec((Bt, 1), lambda i: (i, 0)),          # t block
                pl.BlockSpec((freq_dim, H), lambda i: (0, 0)),    # W1, VMEM-resident
                pl.BlockSpec((2, H), lambda i: (0, 0)),           # [b1; b2]
                pl.BlockSpec((H, H), lambda i: (0, 0)),           # W2, VMEM-resident
            ],
            out_specs=pl.BlockSpec((Bt, H), lambda i: (i, 0)),
            scratch_shapes=[pltpu.VMEM((Bt, freq_dim), jnp.bfloat16)],
        ),
        compiler_params=pltpu.CompilerParams(
            dimension_semantics=("parallel",)),
        cost_estimate=cost,
    )(t_pad, params['w1'], params['b'], params['w2'])
    return out[:N]


# ---------------------------------------------------------------------------
# Pure-JAX reference (mirrors the PyTorch module math in f32)
# ---------------------------------------------------------------------------
def timestep_embedder_ref(t, params, *, freq_dim, max_period=10000.0):
    half = freq_dim // 2
    freqs = jnp.exp(-math.log(max_period) * jnp.arange(half, dtype=jnp.float32) / half)
    args = t.astype(jnp.float32)[:, None] * freqs[None, :]
    emb = jnp.concatenate([jnp.cos(args), jnp.sin(args)], axis=-1)     # (N, F)
    w1 = params['w1'].astype(jnp.float32)
    w2 = params['w2'].astype(jnp.float32)
    b1 = params['b'][0:1].astype(jnp.float32)
    b2 = params['b'][1:2].astype(jnp.float32)
    h = emb @ w1 + b1
    h = h * jax.nn.sigmoid(h)
    return h @ w2 + b2


# ---------------------------------------------------------------------------
# Deterministic parameter init (nn.Linear(F,H) -> SiLU -> nn.Linear(H,H))
# ---------------------------------------------------------------------------
def init_params(key, freq_dim, hidden):
    k1, k2, k3, k4 = jax.random.split(key, 4)
    w1 = 0.02 * jax.random.normal(k1, (freq_dim, hidden), jnp.float32)
    b1 = 0.01 * jax.random.normal(k2, (1, hidden), jnp.float32)
    w2 = 0.02 * jax.random.normal(k3, (hidden, hidden), jnp.float32)
    b2 = 0.01 * jax.random.normal(k4, (1, hidden), jnp.float32)
    return dict(
        w1=w1.astype(jnp.bfloat16),                  # streamed bf16, f32 accumulate
        w2=w2.astype(jnp.bfloat16),
        b=jnp.concatenate([b1, b2], axis=0),         # (2, H) f32, single operand
    )


if __name__ == "__main__":
    FREQ_DIM = 256          # module default frequency_embedding_size
    HIDDEN = 128            # multiple of 128 -> lane-dense output
    N = 2

    key = jax.random.PRNGKey(0)
    params = init_params(key, FREQ_DIM, HIDDEN)
    t = jnp.asarray([3.0, 7.5], jnp.float32)      # fractional timesteps, one per sample

    fwd = jax.jit(functools.partial(timestep_embedder, freq_dim=FREQ_DIM))
    out = jax.block_until_ready(fwd(t, params))
    ref = jax.block_until_ready(timestep_embedder_ref(t, params, freq_dim=FREQ_DIM))

    assert out.shape == (N, HIDDEN), out.shape
    np.testing.assert_allclose(np.asarray(out, np.float32), np.asarray(ref),
                               rtol=3e-2, atol=3e-2)

    # Exercise the multi-block (tiled, parallel) batch path as well.
    t_big = jax.random.uniform(jax.random.PRNGKey(1), (20,), jnp.float32) * 1000.0
    out_big = jax.block_until_ready(
        timestep_embedder(t_big, params, freq_dim=FREQ_DIM, block_rows=8))
    ref_big = timestep_embedder_ref(t_big, params, freq_dim=FREQ_DIM)
    np.testing.assert_allclose(np.asarray(out_big, np.float32), np.asarray(ref_big),
                               rtol=3e-2, atol=3e-2)

    print("KERNEL_OK")
</pallas_src>

<mosaic_0001>
module attributes {stable_mosaic.version = 11 : i64} {
  func.func @timestep_embedder_kernel(%arg0: i32, %arg1: memref<8x1xf32, #tpu.memory_space<vmem>>, %arg2: memref<256x128xbf16, #tpu.memory_space<vmem>>, %arg3: memref<2x128xf32, #tpu.memory_space<vmem>>, %arg4: memref<128x128xbf16, #tpu.memory_space<vmem>>, %arg5: memref<8x128xbf16, #tpu.memory_space<vmem>>, %arg6: memref<8x256xbf16, #tpu.memory_space<vmem>>) attributes {dimension_semantics = [#tpu.dimension_semantics<parallel>], iteration_bounds = array<i64: 1>, scalar_prefetch = 0 : i64, scratch_operands = 1 : i64, tpu.core_type = #tpu.core_type<tc>, window_params = [{transform_indices = @transform_0, window_bounds = array<i64: 8, 1>}, {pipeline_mode = #tpu.pipeline_mode<synchronous>, transform_indices = @transform_1, window_bounds = array<i64: 256, 128>}, {pipeline_mode = #tpu.pipeline_mode<synchronous>, transform_indices = @transform_2, window_bounds = array<i64: 2, 128>}, {pipeline_mode = #tpu.pipeline_mode<synchronous>, transform_indices = @transform_3, window_bounds = array<i64: 128, 128>}, {transform_indices = @transform_4, window_bounds = array<i64: 8, 128>}]} {
    %0 = tpu.iota {dimensions = array<i32: 1>} : vector<1x128xi32>
    %1 = arith.sitofp %0 : vector<1x128xi32> to vector<1x128xf32>
    %cst = arith.constant -0.0719557852 : f32
    %2 = vector.broadcast %cst : f32 to vector<1x128xf32>
    %3 = arith.mulf %2, %1 : vector<1x128xf32>
    %4 = math.exp %3 : vector<1x128xf32>
    %c0 = arith.constant 0 : index
    %c0_0 = arith.constant 0 : index
    %5 = vector.load %arg1[%c0, %c0_0] : memref<8x1xf32, #tpu.memory_space<vmem>>, vector<8x1xf32>
    %6 = vector.broadcast %5 : vector<8x1xf32> to vector<8x128xf32>
    %7 = vector.broadcast %4 : vector<1x128xf32> to vector<8x128xf32>
    %8 = arith.mulf %6, %7 : vector<8x128xf32>
    %9 = math.cos %8 : vector<8x128xf32>
    %10 = arith.truncf %9 : vector<8x128xf32> to vector<8x128xbf16>
    %c0_1 = arith.constant 0 : index
    %c0_2 = arith.constant 0 : index
    %11 = vector.load %arg6[%c0_1, %c0_2] : memref<8x256xbf16, #tpu.memory_space<vmem>>, vector<8x128xbf16>
    tpu.vector_store %arg6[%c0_1, %c0_2], %10 {strides = array<i32>} : memref<8x256xbf16, #tpu.memory_space<vmem>>, vector<8x128xbf16>,
    %12 = math.sin %8 : vector<8x128xf32>
    %13 = arith.truncf %12 : vector<8x128xf32> to vector<8x128xbf16>
    %c0_3 = arith.constant 0 : index
    %c128 = arith.constant 128 : index
    %14 = vector.load %arg6[%c0_3, %c128] : memref<8x256xbf16, #tpu.memory_space<vmem>>, vector<8x128xbf16>
    tpu.vector_store %arg6[%c0_3, %c128], %13 {strides = array<i32>} : memref<8x256xbf16, #tpu.memory_space<vmem>>, vector<8x128xbf16>,
    %c0_4 = arith.constant 0 : index
    %c0_5 = arith.constant 0 : index
    %15 = vector.load %arg6[%c0_4, %c0_5] : memref<8x256xbf16, #tpu.memory_space<vmem>>, vector<8x256xbf16>
    %c0_6 = arith.constant 0 : index
    %c0_7 = arith.constant 0 : index
    %16 = vector.load %arg2[%c0_6, %c0_7] : memref<256x128xbf16, #tpu.memory_space<vmem>>, vector<256x128xbf16>
    %cst_8 = arith.constant dense<0.000000e+00> : vector<8x128xf32>
    %17 = tpu.matmul %15, %16, %cst_8 {dimension_numbers = #tpu.dot_dimension_numbers<[1], [0], [0], [1], [0, 0, 1, 1], [], []>} : vector<8x256xbf16>, vector<256x128xbf16>, vector<8x128xf32> -> vector<8x128xf32>
    %c0_9 = arith.constant 0 : index
    %c0_10 = arith.constant 0 : index
    %18 = vector.load %arg3[%c0_9, %c0_10] : memref<2x128xf32, #tpu.memory_space<vmem>>, vector<1x128xf32>
    %19 = vector.broadcast %18 : vector<1x128xf32> to vector<8x128xf32>
    %20 = arith.addf %17, %19 : vector<8x128xf32>
    %cst_11 = arith.constant 0.000000e+00 : f32
    %21 = vector.broadcast %cst_11 : f32 to vector<8x128xf32>
    %22 = arith.subf %21, %20 : vector<8x128xf32>
    %23 = math.exp %22 : vector<8x128xf32>
    %cst_12 = arith.constant 1.000000e+00 : f32
    %24 = vector.broadcast %cst_12 : f32 to vector<8x128xf32>
    %25 = arith.addf %24, %23 : vector<8x128xf32>
    %26 = tpu.reciprocal %25 {approx = true} : vector<8x128xf32> -> vector<8x128xf32>
    %27 = arith.mulf %20, %26 : vector<8x128xf32>
    %28 = arith.truncf %27 : vector<8x128xf32> to vector<8x128xbf16>
    %c0_13 = arith.constant 0 : index
    %c0_14 = arith.constant 0 : index
    %29 = vector.load %arg4[%c0_13, %c0_14] : memref<128x128xbf16, #tpu.memory_space<vmem>>, vector<128x128xbf16>
    %cst_15 = arith.constant dense<0.000000e+00> : vector<8x128xf32>
    %30 = tpu.matmul %28, %29, %cst_15 {dimension_numbers = #tpu.dot_dimension_numbers<[1], [0], [0], [1], [0, 0, 1, 1], [], []>} : vector<8x128xbf16>, vector<128x128xbf16>, vector<8x128xf32> -> vector<8x128xf32>
    %c1 = arith.constant 1 : index
    %c0_16 = arith.constant 0 : index
    %31 = vector.load %arg3[%c1, %c0_16] : memref<2x128xf32, #tpu.memory_space<vmem>>, vector<1x128xf32>
    %32 = vector.broadcast %31 : vector<1x128xf32> to vector<8x128xf32>
    %33 = arith.addf %30, %32 : vector<8x128xf32>
    %34 = arith.truncf %33 : vector<8x128xf32> to vector<8x128xbf16>
    %c0_17 = arith.constant 0 : index
    %c0_18 = arith.constant 0 : index
    %35 = vector.load %arg5[%c0_17, %c0_18] : memref<8x128xbf16, #tpu.memory_space<vmem>>, vector<8x128xbf16>
    tpu.vector_store %arg5[%c0_17, %c0_18], %34 {strides = array<i32>} : memref<8x128xbf16, #tpu.memory_space<vmem>>, vector<8x128xbf16>,
    return
  }
  func.func @transform_0(%arg0: i32) -> (i32, i32) {
    %c0_i32 = arith.constant 0 : i32
    %c0_i32_0 = arith.constant 0 : i32
    return %arg0, %c0_i32 : i32, i32
  }
  func.func @transform_1(%arg0: i32) -> (i32, i32) {
    %c0_i32 = arith.constant 0 : i32
    %c0_i32_0 = arith.constant 0 : i32
    %c0_i32_1 = arith.constant 0 : i32
    return %c0_i32, %c0_i32_0 : i32, i32
  }
  func.func @transform_2(%arg0: i32) -> (i32, i32) {
    %c0_i32 = arith.constant 0 : i32
    %c0_i32_0 = arith.constant 0 : i32
    %c0_i32_1 = arith.constant 0 : i32
    return %c0_i32, %c0_i32_0 : i32, i32
  }
  func.func @transform_3(%arg0: i32) -> (i32, i32) {
    %c0_i32 = arith.constant 0 : i32
    %c0_i32_0 = arith.constant 0 : i32
    %c0_i32_1 = arith.constant 0 : i32
    return %c0_i32, %c0_i32_0 : i32, i32
  }
  func.func @transform_4(%arg0: i32) -> (i32, i32) {
    %c0_i32 = arith.constant 0 : i32
    %c0_i32_0 = arith.constant 0 : i32
    return %arg0, %c0_i32 : i32, i32
  }
}

</mosaic_0001>

<bundles_post_ra>
// kernel: timestep_embedder.1
= control target key start
LH: loop header
LB: loop body
LE: loop exit
PB: predicated region body
PF: predicated region fallthrough
CT: control target
= control target key end

     0   :  { %9 = vsyncpa [#allocation4], 0  ;;  %s859_s0 = inlined_call_operand.vmem [shape: f32[8,1], index: 0, kind: input, shape index: {}]   ;;  %s860_s1 = inlined_call_operand.hbm [shape: bf16[256,128], index: 1, kind: input, shape index: {}]   ;;  %s861_s2 = inlined_call_operand.vmem [shape: f32[2,128], index: 2, kind: input, shape index: {}]   ;;  %s862_s3 = inlined_call_operand.hbm [shape: bf16[128,128], index: 3, kind: input, shape index: {}]   ;;  %s863_s4 = inlined_call_operand.vmem [shape: bf16[8,128], index: 4, kind: output, shape index: {}]  }
   0x1   :  { %10 = vsyncpa [#allocation6], 0  ;;  %s764_s15 = smov [#allocation3]   ;;  %s716_s19 = scalar_lea.hbm %s860_s1, 2048 }
   0x2   :  { %s18_s16 = sshll.u32 %s764_s15, 4  ;;  %p717_p0 = scmp.ne.s32.totalorder %s860_s1, %s716_s19  ;;  %s19_s16 = int_to_ptr.vmem [resolvable:$true] %s18_s16 }
   0x3   :  { %p720_p1 = scmp.lt.u32.totalorder %s716_s19, %s860_s1 }
   0x5   :  { %p722_p2 = pnand %p720_p1, %p717_p0 }
   0x7   :  { %725 = shalt.err (!%p722_p2)
}
   0x8   :  { %s726_s24 = scalar_lea.vmem %s19_s16, 2048  ;;  %p731_p4 = scmp.lt.s32.totalorder %s19_s16, %s19_s16 }
   0x9   :  { %p727_p3 = scmp.ne.s32.totalorder %s19_s16, %s726_s24  ;;  %p732_p5 = scmp.lt.s32.totalorder %s726_s24, %s726_s24 }
   0xb   :  { %p733_p6 = por %p732_p5, %p731_p4 }
   0xd   :  { %p734_p7 = pnand %p733_p6, %p727_p3 }
   0xf   :  { %737 = shalt.err (!%p734_p7)
}
  0x10   :  { %s765_s25 = smov 64   ;;  %s766_s26 = smov 4  }
  0x11   :  { %24 = dma.hbm_to_vmem [thread:$0]  %s860_s1, 2048, %s19_s16, [#allocation4], %s765_s25, %s765_s25, %s766_s26  }
  0x12   :  { %s767_s29 = smov [#allocation5]   ;;  %s738_s7 = scalar_lea.hbm %s862_s3, 1024 }
  0x13   :  { %s32_s30 = sshll.u32 %s767_s29, 4  ;;  %p739_p8 = scmp.ne.s32.totalorder %s862_s3, %s738_s7  ;;  %s33_s30 = int_to_ptr.vmem [resolvable:$true] %s32_s30 }
  0x14   :  { %p742_p9 = scmp.lt.u32.totalorder %s738_s7, %s862_s3 }
  0x16   :  { %p744_p10 = pnand %p742_p9, %p739_p8 }
  0x18   :  { %747 = shalt.err (!%p744_p10)
}
  0x19   :  { %s748_s12 = scalar_lea.vmem %s33_s30, 1024  ;;  %p753_p12 = scmp.lt.s32.totalorder %s33_s30, %s33_s30 }
  0x1a   :  { %p749_p11 = scmp.ne.s32.totalorder %s33_s30, %s748_s12  ;;  %p754_p13 = scmp.lt.s32.totalorder %s748_s12, %s748_s12 }
  0x1c   :  { %p755_p0 = por %p754_p13, %p753_p12 }
  0x1e   :  { %p756_p1 = pnand %p755_p0, %p749_p11 }
  0x20   :  { %759 = shalt.err (!%p756_p1)
}
  0x21   :  { %38 = dma.hbm_to_vmem [thread:$0]  %s862_s3, 1024, %s33_s30, [#allocation6], %s765_s25, %s765_s25, %s766_s26  }
  0x22   :  { %760 = dma.done.wait [#allocation4], 2048  }
  0x23   :  { %761 = vsyncadd [#allocation4], 4294965248 }
  0x24   :  { %762 = dma.done.wait [#allocation6], 1024  }
  0x25   :  { %763 = vsyncadd [#allocation6], 4294966272  ;;  %v768_v0 = vmov 0   ;;  %v52_v1 = vld [vmem:[%s859_s0] sm:$0xff]  ;;  %v680_v2 = vld [vmem:[#allocation3 + $0x40] sm:$0xff]   ;;  %v46_v18 = vlaneseq }
  0x26   :  { %679 = vset.pattern.permute.xlu0 %v768_v0  ;;  %v681_v3 = vld [vmem:[#allocation3] sm:$0xff]   ;;  %611 = vmatprep.subr.bf16.mxu0 %v680_v2  ;;  %v682_v4 = vld [vmem:[#allocation3 + $0x48] sm:$0xff]   ;;  %v684_v6 = vld [vmem:[#allocation3 + $0x50] sm:$0xff]   ;;  %v769_v36 = vmov 683565275  }
  0x27   :  { %55 = vperm.xlu0 %679, %v52_v1   ;;  %612 = vmatpush3.bf16.msra.mxu0 %v681_v3  ;;  %v683_v5 = vld [vmem:[#allocation3 + $0x8] sm:$0xff]   ;;  %v685_v7 = vld [vmem:[#allocation3 + $0x10] sm:$0xff]   ;;  %v686_v8 = vld [vmem:[#allocation3 + $0x58] sm:$0xff]   ;;  %v47_v19 = vand.u32 127, %v46_v18  ;;  %v770_v38 = vmov 2475754826  }
  0x28   :  { %613 = vmatprep.subr.bf16.mxu0 %v682_v4  ;;  %v687_v9 = vld [vmem:[#allocation3 + $0x18] sm:$0xff]   ;;  %v688_v10 = vld [vmem:[#allocation3 + $0x60] sm:$0xff]   ;;  %v690_v12 = vld [vmem:[#allocation3 + $0x68] sm:$0xff]   ;;  %v771_v41 = vmov 2131351028  }
  0x29   :  { %v689_v11 = vld [vmem:[#allocation3 + $0x20] sm:$0xff]   ;;  %v691_v13 = vld [vmem:[#allocation3 + $0x28] sm:$0xff]   ;;  %v692_v14 = vld [vmem:[#allocation3 + $0x70] sm:$0xff]   ;;  %v48_v20 = vcvt.s32.f32 %v47_v19  ;;  %v772_v44 = vmov 2102212464  }
  0x2a   :  { %v693_v15 = vld [vmem:[#allocation3 + $0x30] sm:$0xff]   ;;  %v694_v16 = vld [vmem:[#allocation3 + $0x78] sm:$0xff]   ;;  %v773_v47 = vmov 920167782   ;;  %v774_v50 = vmov 1326507024  }
  0x2b   :  { %614 = vmatpush3.bf16.msra.mxu0 %v683_v5  ;;  %v695_v17 = vld [vmem:[#allocation3 + $0x38] sm:$0xff]   ;;  %v49_v21 = vmul.f32 -0.071955785, %v48_v20 }
  0x2c   :  { %615 = vmatprep.subr.bf16.mxu0 %v684_v6 }
  0x2d   :  { %v50_v22 = vmul.f32 1.442695, %v49_v21 }
  0x2f   :  { %616 = vmatpush3.bf16.msra.mxu0 %v685_v7  ;;  %706 = vpow2.f32 %v50_v22 }
  0x30   :  { %617 = vmatprep.subr.bf16.mxu0 %v686_v8 }
  0x33   :  { %618 = vmatpush3.bf16.msra.mxu0 %v687_v9 }
  0x34   :  { %619 = vmatprep.subr.bf16.mxu0 %v688_v10 }
  0x37   :  { %620 = vmatpush3.bf16.msra.mxu0 %v689_v11 }
  0x38   :  { %621 = vmatprep.subr.bf16.mxu0 %v690_v12 }
  0x39   :  { %v707_v23 = vpop.eup %706 }
  0x3b   :  { %622 = vmatpush3.bf16.msra.mxu0 %v691_v13 }
  0x3c   :  { %623 = vmatprep.subr.bf16.mxu0 %v692_v14 }
  0x3f   :  { %624 = vmatpush3.bf16.msra.mxu0 %v693_v15 }
  0x40   :  { %625 = vmatprep.subr.bf16.mxu0 %v694_v16 }
  0x43   :  { %626 = vmatpush3.bf16.msra.mxu0 %v695_v17 }
  0xa6   :  { %v56_v24 = vpop.permute.xlu0 %55 }
  0xa7   :  { %v829_v25 = vmul.f32 %v707_v23, %v56_v24 }
  0xa9   :  { %v62_v26 = vand.u32 2139095040, %v829_v25  ;;  %v59_v30 = vand.u32 2147483647, %v829_v25  ;;  %vm61_vm7 = vcmp.lt.s32.totalorder %v829_v25, 0  ;;  %vm151_vm15 = vweird.f32 %v829_v25 }
  0xab   :  { %v63_v27 = vshrl.u32 %v62_v26, 23  ;;  %v66_v33 = vand.u32 8388607, %v59_v30  ;;  %vm60_vm8 = vcmp.le.f32.partialorder %v59_v30, 0.7853982 }
  0xad   :  { %v575_v28 = vadd.s32 4294967169, %v63_v27  ;;  %v67_v52 = vor.u32 8388608, %v66_v33 }
  0xaf   :  { %v69_v29 = vadd.s32 1, %v575_v28  ;;  %v107_v2 = vshll.u32 %v67_v52, 8 }
  0xb1   :  { %vm70_vm0 = vcmp.gt.s32.totalorder %v69_v29, 0 }
  0xb2   :  { %v71_v31 = vsel %vm70_vm0, %v69_v29, 0  ;;  %vm776_vm0 = vmmov 0  }
  0xb3   :  { %v73_v32 = vand.u32 31, %v71_v31  ;;  %v72_v35 = vshrl.u32 %v71_v31, 5 }
  0xb5   :  { %v74_v34 = vsub.s32 32, %v73_v32  ;;  %v76_v37 = vshll.u32 %v769_v36, %v73_v32  ;;  %v79_v39 = vshll.u32 %v770_v38, %v73_v32  ;;  %v82_v43 = vshll.u32 %v771_v41, %v73_v32 }
  0xb6   :  { %v85_v46 = vshll.u32 %v772_v44, %v73_v32  ;;  %v88_v49 = vshll.u32 %v773_v47, %v73_v32  ;;  %vm91_vm1 = vcmp.lt.s32.totalorder %v72_v35, 1  ;;  %vm94_vm2 = vcmp.lt.s32.totalorder %v72_v35, 4 }
  0xb7   :  { %v77_v40 = vshrl.u32 %v770_v38, %v74_v34  ;;  %v80_v42 = vshrl.u32 %v771_v41, %v74_v34  ;;  %v83_v45 = vshrl.u32 %v772_v44, %v74_v34  ;;  %v86_v48 = vshrl.u32 %v773_v47, %v74_v34 }
  0xb8   :  { %v89_v51 = vshrl.u32 %v774_v50, %v74_v34  ;;  %v75_v61 = vshrl.u32 %v769_v36, %v74_v34  ;;  %vm93_vm3 = vcmp.lt.s32.totalorder %v72_v35, 3  ;;  %vm92_vm4 = vcmp.lt.s32.totalorder %v72_v35, 2 }
  0xb9   :  { %v78_v53 = vor.u32 %v77_v40, %v76_v37  ;;  %v81_v54 = vor.u32 %v80_v42, %v79_v39  ;;  %v84_v55 = vor.u32 %v83_v45, %v82_v43  ;;  %v87_v56 = vor.u32 %v86_v48, %v85_v46 }
  0xba   :  { %v90_v57 = vor.u32 %v89_v51, %v88_v49 }
  0xbb   :  { %v96_v58 = vsel %vm94_vm2, %v84_v55, 2102212464  ;;  %v99_v59 = vsel %vm91_vm1, %v78_v53, %v81_v54  ;;  %v103_v60 = vsel %vm91_vm1, %v81_v54, %v84_v55  ;;  %v100_v62 = vsel %vm94_vm2, %v87_v56, 920167782 }
  0xbc   :  { %v104_v63 = vsel %vm94_vm2, %v90_v57, 1326507024  ;;  %v101_v0 = vsel %vm93_vm3, %v84_v55, %v100_v62  ;;  %v95_v3 = vsel %vm91_vm1, %v75_v61, %v78_v53  ;;  %v97_v4 = vsel %vm93_vm3, %v81_v54, %v96_v58 }
  0xbd   :  { %v105_v1 = vsel %vm93_vm3, %v87_v56, %v104_v63  ;;  %v102_v5 = vsel %vm92_vm4, %v99_v59, %v101_v0  ;;  %v98_v11 = vsel %vm92_vm4, %v95_v3, %v97_v4  ;;  %v698_v0 = vld [vmem:[#allocation5] sm:$0xff]   ;;  %v701_v3 = vld [vmem:[#allocation5 + $0x18] sm:$0xff]  }
  0xbe   :  { %v106_v6 = vsel %vm92_vm4, %v103_v60, %v105_v1  ;;  %v838_v9 = vmul.u32.u64.low %v107_v2, %v102_v5  ;;  %v839_v10 = vmul.u32.u64.high %v107_v2, %v102_v5, %v838_v9  ;;  %v114_v13 = vmul.u32 %v107_v2, %v98_v11  ;;  %v702_v4 = vld [vmem:[#allocation5 + $0x20] sm:$0xff]   ;;  %v703_v5 = vld [vmem:[#allocation5 + $0x28] sm:$0xff]  }
  0xbf   :  { %v835_v7 = vmul.u32.u64.low %v107_v2, %v106_v6  ;;  %v836_v8 = vmul.u32.u64.high %v107_v2, %v106_v6, %v835_v7  ;;  %v775_v1 = vmov 0.0   ;;  %v699_v2 = vld [vmem:[#allocation5 + $0x8] sm:$0xff]   ;;  %v704_v6 = vld [vmem:[#allocation5 + $0x30] sm:$0xff]  }
  0xc0   :  { %v117_v12 = vadd.s32 1, %v839_v10  ;;  %642 = vmatprep.subr.bf16.mxu1 %v775_v1  ;;  %658 = vmatprep.mubr.msk.bf16.mxu1 %vm776_vm0, %v775_v1  ;;  %v705_v7 = vld [vmem:[#allocation5 + $0x38] sm:$0xff]  }
  0xc1   :  { %vm116_vm5 = vc.u32 %v836_v8, %v838_v9  ;;  %v115_v26 = vadd.s32 %v838_v9, %v836_v8  ;;  %643 = vmatpush3.bf16.msra.mxu1 %v698_v0  ;;  %v583_v9 = vld [vmem:[%s861_s2] ss:$0 sm:$0xff] }
  0xc2   :  { %v118_v14 = vsel %vm116_vm5, %v117_v12, %v839_v10  ;;  %644 = vmatprep.subr.bf16.mxu1 %v775_v1 }
  0xc3   :  { %v119_v15 = vadd.s32 %v118_v14, %v114_v13 }
  0xc5   :  { %v120_v16 = vadd.s32 536870912, %v119_v15  ;;  %645 = vmatpush3.bf16.msra.mxu1 %v699_v2 }
  0xc6   :  { %646 = vmatprep.subr.bf16.mxu1 %v775_v1 }
  0xc7   :  { %v121_v17 = vshrl.u32 %v120_v16, 30 }
  0xc9   :  { %v122_v18 = vshll.u32 %v121_v17, 30  ;;  %v145_v39 = vsub.s32 4, %v121_v17 }
  0xcb   :  { %v123_v19 = vsub.s32 %v119_v15, %v122_v18  ;;  %v146_v42 = vsel %vm61_vm7, %v145_v39, %v121_v17 }
  0xcc   :  { %v148_v44 = vsel %vm60_vm8, 0, %v146_v42 }
  0xcd   :  { %v125_v20 = vsub.s32 0, %v123_v19  ;;  %v257_v45 = vadd.s32 3, %v148_v44  ;;  %v152_v46 = vand.u32 3, %v148_v44 }
  0xcf   :  { %v576_v21 = vmin.u32 %v125_v20, %v123_v19  ;;  %v258_v47 = vand.u32 3, %v257_v45  ;;  %vm157_vm9 = vcmp.eq.s32.totalorder %v152_v46, 2  ;;  %vm154_vm11 = vcmp.eq.s32.totalorder %v152_v46, 0 }
  0xd0   :  { %vm153_vm13 = vcmp.lt.s32.totalorder %v152_v46, 2 }
  0xd1   :  { %v127_v22 = vclz %v576_v21  ;;  %vm263_vm10 = vcmp.eq.s32.totalorder %v258_v47, 2  ;;  %vm260_vm12 = vcmp.eq.s32.totalorder %v258_v47, 0  ;;  %vm259_vm14 = vcmp.lt.s32.totalorder %v258_v47, 2 }
  0xd3   :  { %v577_v23 = vadd.s32 4294967294, %v127_v22  ;;  %v602_v22 = vld [vmem:[%s861_s2 + $0x1] ss:$0 sm:$0xff] }
  0xd5   :  { %vm578_vm6 = vcmp.lt.s32.totalorder %v577_v23, 0 }
  0xd6   :  { %v130_v24 = vsel %vm578_vm6, 0, %v577_v23 }
  0xd7   :  { %v131_v27 = vsub.s32 32, %v130_v24  ;;  %v135_v28 = vsub.s32 4294967266, %v130_v24  ;;  %v132_v29 = vshll.u32 %v123_v19, %v130_v24 }
  0xd9   :  { %v133_v31 = vshrl.u32 %v115_v26, %v131_v27  ;;  %v136_v32 = vadd.s32 127, %v135_v28 }
  0xdb   :  { %v134_v33 = vor.u32 %v133_v31, %v132_v29  ;;  %v137_v34 = vshll.u32 %v136_v32, 23 }
  0xdd   :  { %v138_v35 = vor.u32 4788187, %v137_v34  ;;  %v141_v37 = vcvt.s32.f32 %v134_v33 }
  0xdf   :  { %v139_v36 = vand.u32 2147483647, %v138_v35 }
  0xe1   :  { %v142_v38 = vmul.f32 %v141_v37, %v139_v36 }
  0xe3   :  { %v143_v40 = vxor.u32 2147483648, %v142_v38 }
  0xe5   :  { %v144_v41 = vsel %vm61_vm7, %v143_v40, %v142_v38 }
  0xe6   :  { %v147_v43 = vsel %vm60_vm8, %v829_v25, %v144_v41  ;;  %v700_v25 = vld [vmem:[#allocation5 + $0x10] sm:$0xff]  }
  0xe7   :  { %708 = vcosq.f32 %v147_v43  ;;  %647 = vmatpush3.bf16.msra.mxu1 %v700_v25 }
  0xe8   :  { %710 = vsinq.f32 %v147_v43  ;;  %648 = vmatprep.subr.bf16.mxu1 %v775_v1 }
  0xeb   :  { %649 = vmatpush3.bf16.msra.mxu1 %v701_v3 }
  0xec   :  { %650 = vmatprep.subr.bf16.mxu1 %v775_v1 }
  0xef   :  { %651 = vmatpush3.bf16.msra.mxu1 %v702_v4 }
  0xf0   :  { %652 = vmatprep.subr.bf16.mxu1 %v775_v1 }
  0xf1   :  { %v709_v48 = vpop.eup %708 }
  0xf2   :  { %v711_v49 = vpop.eup %710  ;;  %v158_v50 = vxor.u32 2147483648, %v709_v48 }
  0xf3   :  { %v155_v51 = vxor.u32 2147483648, %v711_v49  ;;  %653 = vmatpush3.bf16.msra.mxu1 %v703_v5 }
  0xf4   :  { %v159_v52 = vsel %vm157_vm9, %v158_v50, %v711_v49  ;;  %v265_v30 = vsel %vm263_vm10, %v158_v50, %v711_v49  ;;  %654 = vmatprep.subr.bf16.mxu1 %v775_v1 }
  0xf5   :  { %v156_v53 = vsel %vm154_vm11, %v709_v48, %v155_v51  ;;  %v262_v54 = vsel %vm260_vm12, %v709_v48, %v155_v51 }
  0xf6   :  { %v160_v55 = vsel %vm153_vm13, %v156_v53, %v159_v52  ;;  %v266_v56 = vsel %vm259_vm14, %v262_v54, %v265_v30 }
  0xf7   :  { %v161_v57 = vsel %vm151_vm15, nan, %v160_v55  ;;  %v267_v58 = vsel %vm151_vm15, nan, %v266_v56  ;;  %655 = vmatpush3.bf16.msra.mxu1 %v704_v6 }
  0xf8   :  { %v162_v59 = vpack.c.bf16 %v161_v57, %v161_v57  ;;  %v268_v60 = vpack.c.bf16 %v267_v58, %v267_v58  ;;  %656 = vmatprep.subr.bf16.mxu1 %v775_v1 }
  0xfa   :  { %163 = vst [vmem:[#allocation2] sm:$0xf] %v162_v59  ;;  %269 = vst [vmem:[#allocation2 + $0x4] sm:$0xf] %v268_v60 }
  0xfb   :  { %657 = vmatpush3.bf16.msra.mxu1 %v705_v7 }
 0x101   :  { %v270_v61 = vld [vmem:[#allocation2] sm:$0xff] }
 0x102   :  { %v584_v62 = vcombine.low %v270_v61, %v270_v61  ;;  %v585_v63 = vcombine.high %v270_v61, %v270_v61 }
 0x104   :  { %443 = vmatprep.mubr.bf16.mxu0 %v585_v63 }
 0x105   :  { %444 = vmatmul.mubr.bf16.vlgmr.msra.gmra.mrb[0].mxu0 %v584_v62 }
 0x1d8   :  { %v627_v8 = vpop.f32.mrb[0].mxu0 }
 0x1d9   :  { %v628_v10 = vpop.f32.mrb[1].mxu0 }
 0x1da   :  { %v629_v11 = vadd.f32 %v628_v10, %v627_v8  ;;  %v630_v12 = vpop.f32.mrb[2].mxu0 }
 0x1db   :  { %v631_v13 = vpop.f32.mrb[3].mxu0 }
 0x1dc   :  { %v446_v14 = vadd.f32 %v629_v11, %v583_v9 }
 0x1de   :  { %v451_v15 = vsub.f32 0.0, %v446_v14 }
 0x1e0   :  { %v452_v16 = vmul.f32 1.442695, %v451_v15 }
 0x1e2   :  { %712 = vpow2.f32 %v452_v16 }
 0x1ec   :  { %v713_v17 = vpop.eup %712 }
 0x1ed   :  { %v454_v18 = vadd.f32 1.0, %v713_v17 }
 0x1ef   :  { %714 = vrcp.f32 %v454_v18 }
 0x1f9   :  { %v715_v19 = vpop.eup %714 }
 0x1fa   :  { %v456_v20 = vmul.f32 %v715_v19, %v446_v14 }
 0x1fc   :  { %v457_v21 = vpack.c.bf16 %v456_v20, %v456_v20 }
 0x1fe   :  { %659 = vmatmul.mubr.bf16.vlgmr.msra.gmra.mrb[0].mxu1 %v457_v21 }
 0x2d1   :  { %v561_v23 = vpop.f32.mrb[0].mxu1 }
 0x2d2   :  { %v562_v24 = vadd.f32 %v602_v22, %v561_v23  ;;  %v660_v26 = vpop.f32.mrb[1].mxu1 }
 0x2d3   :  { %v564_v27 = vpop.f32.mrb[2].mxu1 }
 0x2d4   :  { %v567_v28 = vpack.c.bf16 %v562_v24, %v562_v24  ;;  %v661_v29 = vpop.f32.mrb[3].mxu1 }
 0x2d6   :  { %568 = vst [vmem:[%s863_s4] sm:$0xf] %v567_v28 }
 0x2d7   :  { %573 = vsyncpa [#allocation4], 1 }
 0x2d8   :  { %574 = vsyncpa [#allocation6], 1 }

</bundles_post_ra>
